<compile_context>
chip_gen: v6e
topology: v6e:2x2x1
jax: 0.10.0
libtpu: 0.0.40
codegen_flags: <defaults>
</compile_context>

<pallas_src>
import jax
import jax.numpy as jnp
from jax.experimental import pallas as pl
from jax.experimental.pallas import tpu as pltpu


def _round_up(x, m):
    return ((x + m - 1) // m) * m


def action_head_kernel(x_ref, w_ref, b_ref, o_ref):
    # x_ref : (tm, H)  tile of flattened embeddings
    # w_ref : (2, H)   classifier weight, natural nn.Linear layout (out, in)
    # b_ref : (2, 1)   bias
    # o_ref : (2, tm)  transposed logits tile (lane-dense)
    acc = jax.lax.dot_general(
        w_ref[...], x_ref[...],
        dimension_numbers=(((1,), (1,)), ((), ())),   # contract on H
        preferred_element_type=jnp.float32,
    )                                                  # (2, tm), f32
    o_ref[...] = (acc + b_ref[...].astype(jnp.float32)).astype(o_ref.dtype)


# Budget for the double-buffered x tile: 16 MiB keeps us inside the 32 MiB
# scoped VMEM we request on every generation (v5e default 16, v6e/v7x 32)
# while being large enough (>=512-row-class tiles for H<=4096 f32) to reach
# ~85%+ of HBM roofline.
_X_TILE_BUDGET_BYTES = 16 * 1024 * 1024
_VMEM_LIMIT_BYTES = 32 * 1024 * 1024


def _choose_tm(M, H, itemsize):
    # Sublane packing granularity: 8 rows for 32-bit, 16 for bf16, 32 for int8.
    sublane = max(8, 8 * (4 // itemsize))
    # Largest lane-aligned tile whose double-buffered x stream fits the budget.
    tm = _X_TILE_BUDGET_BYTES // (2 * H * itemsize)
    tm = max(128, (tm // 128) * 128)
    tm = min(tm, 2048)
    if M <= tm:
        # Small-input case: single tile, no over-padding.  Block == full array,
        # so the (8,128) layout constraint is still satisfied.
        tm = max(sublane, _round_up(M, sublane))
    return tm


def action_head(embeddings, weight, bias):
    """Equivalent of ActionHead.forward: embeddings @ weight.T + bias.

    embeddings: (..., H)   weight: (2, H)   bias: (2,)
    returns:    (..., 2)
    """
    orig_shape = embeddings.shape
    H = orig_shape[-1]
    x = embeddings.reshape(-1, H)
    M = x.shape[0]

    itemsize = jnp.dtype(embeddings.dtype).itemsize
    tm = _choose_tm(M, H, itemsize)
    M_pad = _round_up(M, tm)
    if M_pad != M:
        x = jnp.pad(x, ((0, M_pad - M), (0, 0)))

    b2 = bias.reshape(2, 1)

    cost = pl.CostEstimate(
        flops=4 * M_pad * H,                          # 2 outputs * 2 flops/MAC
        transcendentals=0,
        bytes_accessed=(M_pad * H * itemsize          # x stream (dominant)
                        + 2 * H * jnp.dtype(weight.dtype).itemsize
                        + 2 * M_pad * itemsize),
    )

    out_t = pl.pallas_call(
        action_head_kernel,
        out_shape=jax.ShapeDtypeStruct((2, M_pad), embeddings.dtype),
        grid_spec=pltpu.PrefetchScalarGridSpec(
            num_scalar_prefetch=0,
            grid=(M_pad // tm,),
            in_specs=[
                pl.BlockSpec((tm, H), lambda i: (i, 0)),  # x rows, tiled over M
                pl.BlockSpec((2, H), lambda i: (0, 0)),   # weight stays resident
                pl.BlockSpec((2, 1), lambda i: (0, 0)),   # bias stays resident
            ],
            out_specs=pl.BlockSpec((2, tm), lambda i: (0, i)),  # lane-dense
        ),
        compiler_params=pltpu.CompilerParams(
            dimension_semantics=("parallel",),     # megacore-shardable on v7x
            vmem_limit_bytes=_VMEM_LIMIT_BYTES,
        ),
        cost_estimate=cost,
    )(x, weight, b2)

    out = out_t[:, :M].T                           # trivial (2, M) -> (M, 2)
    return out.reshape(*orig_shape[:-1], 2)


if __name__ == "__main__":
    # Small, deterministic example consistent with the module's forward:
    # embeddings (batch=2, seq=8, hidden=32) -> logits (2, 8, 2)
    batch, seq, hidden = 2, 8, 32

    key = jax.random.PRNGKey(0)
    k_emb, k_w, k_b = jax.random.split(key, 3)

    embeddings = jax.random.normal(k_emb, (batch, seq, hidden), dtype=jnp.float32)
    # Deterministic synthetic parameters (shapes match nn.Linear(hidden, 2)).
    weight = jax.random.normal(k_w, (2, hidden), dtype=jnp.float32) * 0.02
    bias = jax.random.normal(k_b, (2,), dtype=jnp.float32) * 0.02

    out = action_head(embeddings, weight, bias)
    out = jax.block_until_ready(out)

    # Reference check in plain JAX (same math as torch nn.Linear).
    ref = embeddings @ weight.T + bias
    assert out.shape == (batch, seq, 2)
    assert jnp.allclose(out, ref, atol=1e-5, rtol=1e-5)

    print("KERNEL_OK")
</pallas_src>

<mosaic_0001>
module attributes {stable_mosaic.version = 11 : i64} {
  func.func @action_head_kernel(%arg0: i32, %arg1: memref<16x32xf32, #tpu.memory_space<vmem>>, %arg2: memref<2x32xf32, #tpu.memory_space<vmem>>, %arg3: memref<2x1xf32, #tpu.memory_space<vmem>>, %arg4: memref<2x16xf32, #tpu.memory_space<vmem>>) attributes {dimension_semantics = [#tpu.dimension_semantics<parallel>], iteration_bounds = array<i64: 1>, scalar_prefetch = 0 : i64, scratch_operands = 0 : i64, tpu.core_type = #tpu.core_type<tc>, window_params = [{transform_indices = @transform_0, window_bounds = array<i64: 16, 32>}, {pipeline_mode = #tpu.pipeline_mode<synchronous>, transform_indices = @transform_1, window_bounds = array<i64: 2, 32>}, {pipeline_mode = #tpu.pipeline_mode<synchronous>, transform_indices = @transform_2, window_bounds = array<i64: 2, 1>}, {transform_indices = @transform_3, window_bounds = array<i64: 2, 16>}]} {
    %c0 = arith.constant 0 : index
    %c0_0 = arith.constant 0 : index
    %0 = vector.load %arg2[%c0, %c0_0] : memref<2x32xf32, #tpu.memory_space<vmem>>, vector<2x32xf32>
    %c0_1 = arith.constant 0 : index
    %c0_2 = arith.constant 0 : index
    %1 = vector.load %arg1[%c0_1, %c0_2] : memref<16x32xf32, #tpu.memory_space<vmem>>, vector<16x32xf32>
    %cst = arith.constant dense<0.000000e+00> : vector<2x16xf32>
    %2 = tpu.matmul %0, %1, %cst {dimension_numbers = #tpu.dot_dimension_numbers<[1], [1], [0], [0], [0, 0, 1, 0], [], []>} : vector<2x32xf32>, vector<16x32xf32>, vector<2x16xf32> -> vector<2x16xf32>
    %c0_3 = arith.constant 0 : index
    %c0_4 = arith.constant 0 : index
    %3 = vector.load %arg3[%c0_3, %c0_4] : memref<2x1xf32, #tpu.memory_space<vmem>>, vector<2x1xf32>
    %4 = vector.broadcast %3 : vector<2x1xf32> to vector<2x16xf32>
    %5 = arith.addf %2, %4 : vector<2x16xf32>
    %c0_5 = arith.constant 0 : index
    %c0_6 = arith.constant 0 : index
    %6 = vector.load %arg4[%c0_5, %c0_6] : memref<2x16xf32, #tpu.memory_space<vmem>>, vector<2x16xf32>
    tpu.vector_store %arg4[%c0_5, %c0_6], %5 {strides = array<i32>} : memref<2x16xf32, #tpu.memory_space<vmem>>, vector<2x16xf32>,
    return
  }
  func.func @transform_0(%arg0: i32) -> (i32, i32) {
    %c0_i32 = arith.constant 0 : i32
    %c0_i32_0 = arith.constant 0 : i32
    return %arg0, %c0_i32 : i32, i32
  }
  func.func @transform_1(%arg0: i32) -> (i32, i32) {
    %c0_i32 = arith.constant 0 : i32
    %c0_i32_0 = arith.constant 0 : i32
    %c0_i32_1 = arith.constant 0 : i32
    return %c0_i32, %c0_i32_0 : i32, i32
  }
  func.func @transform_2(%arg0: i32) -> (i32, i32) {
    %c0_i32 = arith.constant 0 : i32
    %c0_i32_0 = arith.constant 0 : i32
    %c0_i32_1 = arith.constant 0 : i32
    return %c0_i32, %c0_i32_0 : i32, i32
  }
  func.func @transform_3(%arg0: i32) -> (i32, i32) {
    %c0_i32 = arith.constant 0 : i32
    %c0_i32_0 = arith.constant 0 : i32
    return %c0_i32, %arg0 : i32, i32
  }
}

</mosaic_0001>

<bundles_post_ra>
// kernel: tpu_custom_call.1
= control target key start
LH: loop header
LB: loop body
LE: loop exit
PB: predicated region body
PF: predicated region fallthrough
CT: control target
= control target key end

     0   :  { %8 = vsyncpa [#allocation3], 0  ;;  %s239_s0 = inlined_call_operand.hbm [shape: f32[16,32], index: 0, kind: input, shape index: {}]   ;;  %s240_s1 = inlined_call_operand.vmem [shape: f32[2,32], index: 1, kind: input, shape index: {}]   ;;  %s241_s2 = inlined_call_operand.vmem [shape: f32[2,1], index: 2, kind: input, shape index: {}]   ;;  %s242_s3 = inlined_call_operand.hbm [shape: f32[2,16], index: 3, kind: output, shape index: {}]  }
   0x1   :  { %9 = vsyncpa [#allocation4], 0  ;;  %s200_s12 = smov [#allocation2]  }
   0x2   :  { %s15_s13 = sshll.u32 %s200_s12, 4  ;;  %s16_s13 = int_to_ptr.vmem [resolvable:$true] %s15_s13 }
   0x3   :  { %s164_s14 = scalar_lea.vmem %s16_s13, 256  ;;  %p169_p1 = scmp.lt.s32.totalorder %s16_s13, %s16_s13 }
   0x4   :  { %p165_p0 = scmp.ne.s32.totalorder %s16_s13, %s164_s14  ;;  %p170_p2 = scmp.lt.s32.totalorder %s164_s14, %s164_s14 }
   0x6   :  { %p171_p3 = por %p170_p2, %p169_p1 }
   0x8   :  { %p172_p4 = pnand %p171_p3, %p165_p0 }
   0xa   :  { %175 = shalt.err (!%p172_p4)
}
   0xb   :  { %s201_s15 = smov 128   ;;  %s202_s16 = smov 8  }
   0xc   :  { %21 = dma.hbm_to_vmem [thread:$0]  %s239_s0, 256, %s16_s13, [#allocation3], %s201_s15, %s201_s15, %s202_s16  }
   0xd   :  { %196 = dma.done.wait [#allocation3], 256  }
   0xe   :  { %197 = vsyncadd [#allocation3], 4294967040  ;;  %v203_v0 = vmov 0.0   ;;  %vm204_vm0 = vmmov 0   ;;  %v205_v1 = vmov 0   ;;  %vm38_vm1 = vcmask 261120  }
   0xf   :  { %141 = vmatprep.subr.mxu0 %v203_v0  ;;  %145 = vmatprep.mubr.msk.f32.mxu0 %vm204_vm0, %v203_v0  ;;  %v31_v2 = vld [vmem:[#allocation2 + $0x8] sm:$0xff]  ;;  %v32_v3 = vld [vmem:[%s241_s2] sm:$0x3]  ;;  %s206_s22 = smov [#allocation5]   ;;  %vm118_vm2 = vcmask 123904  }
  0x10   :  { %155 = vset.pattern.permute.xlu0 %v205_v1  ;;  %142 = vmatpush3.xpose.msk.msra.mxu0 %vm38_vm1, %v31_v2  ;;  %v30_v4 = vld [vmem:[#allocation2] sm:$0xff]  ;;  %s126_s23 = sshll.u32 %s206_s22, 4  ;;  %s127_s23 = int_to_ptr.vmem [resolvable:$true] %s126_s23 }
  0x11   :  { %143 = vmatprep.subr.mxu0 %v203_v0  ;;  %35 = vperm.xlu0 %155, %v32_v3   ;;  %v29_v5 = vld [vmem:[%s240_s1] sm:$0x3]  ;;  %s176_s24 = scalar_lea.vmem %s127_s23, 32  ;;  %p181_p6 = scmp.lt.s32.totalorder %s127_s23, %s127_s23 }
  0x12   :  { %p177_p5 = scmp.ne.s32.totalorder %s127_s23, %s176_s24  ;;  %p182_p7 = scmp.lt.s32.totalorder %s176_s24, %s176_s24 }
  0x14   :  { %144 = vmatpush3.xpose.msk.msra.mxu0 %vm38_vm1, %v30_v4  ;;  %p183_p8 = por %p182_p7, %p181_p6 }
  0x16   :  { %p184_p9 = pnand %p183_p8, %p177_p5 }
  0x17   :  { %146 = vmatmul.mubr.msk.f32.vlgmr.msra.gmra.mxu0 %vm38_vm1, %v29_v5 }
  0x8c   :  { %v36_v6 = vpop.permute.xlu0 %35 }
  0xd7   :  { %v114_v7 = vpop.f32.mrf.mxu0 }
  0xd8   :  { %v115_v8 = vadd.f32 %v114_v7, %v36_v6 }
  0xd9   :  { %v147_v9 = vpop.f32.mrf.mxu0 }
  0xda   :  { %119 = vst.msk [vmem:[#allocation5] sm:$0x3] %vm118_vm2, %v115_v8 }
  0xdb   :  { %187 = shalt.err (!%p184_p9)
}
  0xdc   :  { %129 = dma.vmem_to_hbm [thread:$0]  %s127_s23, 32, %s242_s3, [#allocation4]  }
  0xdd   :  { %198 = dma.done.wait [#allocation4], 32  }
  0xde   :  { %199 = vsyncadd [#allocation4], 4294967264 }
  0xdf   :  { %133 = vsyncpa [#allocation3], 1 }
  0xe0   :  { %134 = vsyncpa [#allocation4], 1 }

</bundles_post_ra>
